<compile_context>
chip_gen: v7x
topology: tpu7x:2x2x1
jax: 0.10.0
libtpu: 0.0.40
codegen_flags: <defaults>
</compile_context>

<pallas_src>
import functools

import jax
import jax.numpy as jnp
from jax.experimental import pallas as pl
from jax.experimental.pallas import tpu as pltpu


def _round_up(x, m):
    return (x + m - 1) // m * m


# ----------------------------------------------------------------------------
# Pallas kernel: plane-sum -> fused linear -> softplus -> FC2 -> gated tanh
# ----------------------------------------------------------------------------
def _decoder_kernel(f_ref, b_ref, wf_ref, wb_ref, bfu_ref, w2_ref, b2_ref,
                    out_ref, *, rgb_scale: float):
    tn, n_planes, m, c = f_ref.shape
    rows = tn * m

    # Plane sum (the mean's 1/n_planes is folded into wf/wb).  n_planes is
    # tiny and static, so this unrolls into a few VPU adds; each plane slice
    # is loaded exactly once straight from the pipelined VMEM buffer.
    f_sum = f_ref[:, 0]
    b_sum = b_ref[:, 0]
    for p in range(1, n_planes):
        f_sum = f_sum + f_ref[:, p]
        b_sum = b_sum + b_ref[:, p]

    # Collapse (tn, M) -> rows.  The lane dim C is untouched and M is a
    # multiple of 8, so this is a layout-free leading-dim collapse.
    f_sum = f_sum.reshape(rows, c)
    b_sum = b_sum.reshape(rows, c)

    # Fused (value -> fc -> FC1) affine map, split into front/back halves so
    # no lane-axis concat is ever needed.
    h = (jnp.dot(f_sum, wf_ref[...], preferred_element_type=jnp.float32)
         + jnp.dot(b_sum, wb_ref[...], preferred_element_type=jnp.float32)
         + bfu_ref[...])
    h = jax.nn.softplus(h)

    # Second FC.  The rgb columns of w2/b2 are pre-scaled by 0.5 in the
    # wrapper so that the gated sigmoid becomes a single EUP tanh:
    #   sigmoid(z) * s - eps == (0.5*s) * tanh(z/2) + (0.5*s - eps)
    # and 0.5*s - eps == 0.5 for both s = 1 + 2*eps and s = 1 (force_sigmoid).
    out = jnp.dot(h, w2_ref[...], preferred_element_type=jnp.float32) + b2_ref[...]
    rgb = rgb_scale * jnp.tanh(out) + 0.5

    # column 0 = raw sigma, columns 1.. = activated rgb.
    col = jax.lax.broadcasted_iota(jnp.int32, (1, out.shape[-1]), 1)
    out_ref[...] = jnp.where(col == 0, out, rgb)


# ----------------------------------------------------------------------------
# Tile-size pick: largest divisor of N whose pipeline buffers fit the budget.
# ----------------------------------------------------------------------------
def _pick_tn(n, n_planes, m, c, out_w, hidden, itemsize, vmem_budget):
    cpad = _round_up(c, 128)       # feature lane padding (C=16 -> 128)
    opad = _round_up(out_w, 128)   # output lane padding (4 -> 128)
    mpad = _round_up(m, 8)

    def est(cand):
        rows = cand * m
        feat = cand * n_planes * mpad * cpad * itemsize    # one feature buffer
        outb = _round_up(rows, 8) * opad * 4               # one output buffer
        inter = rows * hidden * 4 * 2                      # hidden temporaries
        return 2 * 2 * feat + 2 * outb + inter             # 2 inputs, 2x buffered

    best = 1
    for cand in range(1, n + 1):
        if n % cand == 0 and est(cand) <= vmem_budget:
            best = cand
    if best == n and n > 1:   # keep >= 2 grid steps so both v7x cores get work
        for cand in range(best - 1, 0, -1):
            if n % cand == 0:
                best = cand
                break
    return best


# ----------------------------------------------------------------------------
# Weight fusion (value -> fc -> FC1 pre-multiplied; 1/n_planes and the tanh
# half-argument folded in).
# ----------------------------------------------------------------------------
def fuse_params(params, n_planes):
    w = params["wv"] @ params["wfc"] @ params["w1"]                          # (2C, H)
    bfu = (params["bv"] @ params["wfc"] + params["bfc"]) @ params["w1"] + params["b1"]
    c = params["w1"].shape[0]
    inv_p = 1.0 / float(n_planes)
    # Pre-scale the rgb columns (1..) of the last layer by 0.5 so the kernel's
    # tanh-form sigmoid needs no extra multiply; the sigma column stays raw.
    w2, b2 = params["w2"], params["b2"]
    col_scale = jnp.ones((1, w2.shape[1]), w2.dtype).at[0, 1:].set(0.5)
    return {"wf": w[:c] * inv_p, "wb": w[c:] * inv_p, "bfu": bfu,
            "w2": w2 * col_scale, "b2": b2 * col_scale}


# ----------------------------------------------------------------------------
# Wrapper
# ----------------------------------------------------------------------------
def multiview_osg_decoder(front, back, ray_directions, params, *,
                          force_sigmoid=False, tn=None, feature_dtype=None,
                          vmem_budget_bytes=28 * 1024 * 1024,
                          vmem_limit_bytes=40 * 1024 * 1024):
    """front/back: (N, n_planes, M, C) float32; ray_directions unused (inert)."""
    del ray_directions  # softmax over a singleton key axis == 1 -> attention inert

    n, n_planes, m, c = front.shape
    assert back.shape == front.shape
    assert m % 8 == 0, "M must be a multiple of 8 (sublane alignment)"

    if feature_dtype is not None:   # opt-in, e.g. jnp.bfloat16 (extra XLA cast pass)
        front = front.astype(feature_dtype)
        back = back.astype(feature_dtype)
    itemsize = jnp.dtype(front.dtype).itemsize

    fused = fuse_params(params, n_planes)
    wf = fused["wf"].astype(front.dtype)
    wb = fused["wb"].astype(front.dtype)
    bfu, w2, b2 = fused["bfu"], fused["w2"], fused["b2"]
    out_w = w2.shape[1]
    hidden = wf.shape[1]

    if tn is None:
        tn = _pick_tn(n, n_planes, m, c, out_w, hidden, itemsize, vmem_budget_bytes)
    assert n % tn == 0, "tn must divide N"

    eps = 0.001
    rgb_scale = 0.5 if force_sigmoid else 0.5 * (1.0 + 2.0 * eps)

    feat_spec = pl.BlockSpec((tn, n_planes, m, c), lambda i: (i, 0, 0, 0))

    def full_spec(arr):
        nd = arr.ndim
        return pl.BlockSpec(arr.shape, lambda i, _nd=nd: (0,) * _nd)

    kernel = functools.partial(_decoder_kernel, rgb_scale=rgb_scale)

    out = pl.pallas_call(
        kernel,
        out_shape=jax.ShapeDtypeStruct((n * m, out_w), jnp.float32),
        grid_spec=pltpu.PrefetchScalarGridSpec(
            num_scalar_prefetch=0,
            grid=(n // tn,),
            in_specs=[
                feat_spec, feat_spec,
                full_spec(wf), full_spec(wb), full_spec(bfu),
                full_spec(w2), full_spec(b2),
            ],
            out_specs=pl.BlockSpec((tn * m, out_w), lambda i: (i, 0)),
        ),
        compiler_params=pltpu.CompilerParams(
            dimension_semantics=("parallel",),
            vmem_limit_bytes=vmem_limit_bytes),
    )(front, back, wf, wb, bfu, w2, b2)

    out = out.reshape(n, m, out_w)
    return {"rgb": out[..., 1:], "sigma": out[..., 0:1]}


# ----------------------------------------------------------------------------
# Deterministic parameter init (shapes follow the PyTorch __init__).
# Effective (pre-transposed, pre-gained) per-layer weights; fusion is done in
# the wrapper.
# ----------------------------------------------------------------------------
def init_params(key, n_features, hidden_dim=64, decoder_output_dim=3,
                decoder_lr_mul=1.0):
    C = n_features
    d_model = 2 * C
    ks = jax.random.split(key, 8)

    # CrossAttention value / fc (nn.Linear): y = x @ W.T + b
    wv_raw = jax.random.normal(ks[0], (d_model, d_model), jnp.float32) / jnp.sqrt(d_model)
    bv_raw = jax.random.normal(ks[1], (d_model,), jnp.float32) * 0.01
    wfc_raw = jax.random.normal(ks[2], (d_model // 2, d_model), jnp.float32) / jnp.sqrt(d_model)
    bfc_raw = jax.random.normal(ks[3], (d_model // 2,), jnp.float32) * 0.01
    # (query / key Linear layers exist in the torch module but are inert.)

    lr = decoder_lr_mul
    w1_raw = jax.random.normal(ks[4], (hidden_dim, C), jnp.float32) / lr
    b1_raw = jnp.zeros((hidden_dim,), jnp.float32)              # bias_init = 0
    g1 = lr / jnp.sqrt(jnp.float32(C))

    w2_raw = jax.random.normal(ks[5], (1 + decoder_output_dim, hidden_dim), jnp.float32) / lr
    b2_raw = jnp.zeros((1 + decoder_output_dim,), jnp.float32)
    g2 = lr / jnp.sqrt(jnp.float32(hidden_dim))

    return {
        "wv": wv_raw.T, "bv": bv_raw[None, :],
        "wfc": wfc_raw.T, "bfc": bfc_raw[None, :],
        "w1": (w1_raw * g1).T, "b1": (b1_raw * lr)[None, :],
        "w2": (w2_raw * g2).T, "b2": (b2_raw * lr)[None, :],
    }


# ----------------------------------------------------------------------------
# Pure-JAX reference (mirrors the PyTorch forward, unfused) for correctness.
# ----------------------------------------------------------------------------
def reference_forward(front, back, params, force_sigmoid=False):
    N, P, M, C = front.shape
    f = front.mean(axis=1).reshape(N * M, C)
    b = back.mean(axis=1).reshape(N * M, C)
    x = jnp.concatenate([f, b], axis=-1)
    v = x @ params["wv"] + params["bv"]          # attention weights == 1
    h = v @ params["wfc"] + params["bfc"]
    h1 = jax.nn.softplus(h @ params["w1"] + params["b1"])
    out = h1 @ params["w2"] + params["b2"]
    out = out.reshape(N, M, -1)
    if force_sigmoid:
        rgb = jax.nn.sigmoid(out[..., 1:])
    else:
        rgb = jax.nn.sigmoid(out[..., 1:]) * (1 + 2 * 0.001) - 0.001
    return {"rgb": rgb, "sigma": out[..., 0:1]}


if __name__ == "__main__":
    N, P, M, C = 4, 3, 32, 16            # small shapes; N*M = 128
    out_dim = 3
    key = jax.random.PRNGKey(0)
    k_f, k_b, k_r, k_p = jax.random.split(key, 4)

    front = jax.random.normal(k_f, (N, P, M, C), jnp.float32)
    back = jax.random.normal(k_b, (N, P, M, C), jnp.float32)
    ray_directions = jax.random.normal(k_r, (N * M, 3), jnp.float32)

    params = init_params(k_p, n_features=C, hidden_dim=64,
                         decoder_output_dim=out_dim, decoder_lr_mul=1.0)

    out = multiview_osg_decoder(front, back, ray_directions, params,
                                force_sigmoid=False)
    jax.block_until_ready(out)

    ref = reference_forward(front, back, params, force_sigmoid=False)
    assert out["rgb"].shape == (N, M, out_dim)
    assert out["sigma"].shape == (N, M, 1)
    assert jnp.allclose(out["rgb"], ref["rgb"], rtol=1e-4, atol=1e-4)
    assert jnp.allclose(out["sigma"], ref["sigma"], rtol=1e-4, atol=1e-4)

    print("KERNEL_OK")
</pallas_src>

<mosaic_0001>
module attributes {stable_mosaic.version = 11 : i64} {
  func.func @_decoder_kernel(%arg0: i32, %arg1: memref<2x3x32x16xf32, #tpu.memory_space<vmem>>, %arg2: memref<2x3x32x16xf32, #tpu.memory_space<vmem>>, %arg3: memref<16x64xf32, #tpu.memory_space<vmem>>, %arg4: memref<16x64xf32, #tpu.memory_space<vmem>>, %arg5: memref<1x64xf32, #tpu.memory_space<vmem>>, %arg6: memref<64x4xf32, #tpu.memory_space<vmem>>, %arg7: memref<1x4xf32, #tpu.memory_space<vmem>>, %arg8: memref<64x4xf32, #tpu.memory_space<vmem>>) attributes {dimension_semantics = [#tpu.dimension_semantics<parallel>], iteration_bounds = array<i64: 2>, scalar_prefetch = 0 : i64, scratch_operands = 0 : i64, tpu.core_type = #tpu.core_type<tc>, window_params = [{transform_indices = @transform_0, window_bounds = array<i64: 2, 3, 32, 16>}, {transform_indices = @transform_1, window_bounds = array<i64: 2, 3, 32, 16>}, {pipeline_mode = #tpu.pipeline_mode<synchronous>, transform_indices = @transform_2, window_bounds = array<i64: 16, 64>}, {pipeline_mode = #tpu.pipeline_mode<synchronous>, transform_indices = @transform_3, window_bounds = array<i64: 16, 64>}, {pipeline_mode = #tpu.pipeline_mode<synchronous>, transform_indices = @transform_4, window_bounds = array<i64: 1, 64>}, {pipeline_mode = #tpu.pipeline_mode<synchronous>, transform_indices = @transform_5, window_bounds = array<i64: 64, 4>}, {pipeline_mode = #tpu.pipeline_mode<synchronous>, transform_indices = @transform_6, window_bounds = array<i64: 1, 4>}, {transform_indices = @transform_7, window_bounds = array<i64: 64, 4>}]} {
    %c0 = arith.constant 0 : index
    %c0_0 = arith.constant 0 : index
    %c0_1 = arith.constant 0 : index
    %c0_2 = arith.constant 0 : index
    %0 = vector.load %arg1[%c0, %c0_0, %c0_1, %c0_2] : memref<2x3x32x16xf32, #tpu.memory_space<vmem>>, vector<2x1x32x16xf32>
    %1 = vector.shape_cast %0 : vector<2x1x32x16xf32> to vector<2x32x16xf32>
    %c0_3 = arith.constant 0 : index
    %c0_4 = arith.constant 0 : index
    %c0_5 = arith.constant 0 : index
    %c0_6 = arith.constant 0 : index
    %2 = vector.load %arg2[%c0_3, %c0_4, %c0_5, %c0_6] : memref<2x3x32x16xf32, #tpu.memory_space<vmem>>, vector<2x1x32x16xf32>
    %3 = vector.shape_cast %2 : vector<2x1x32x16xf32> to vector<2x32x16xf32>
    %c0_7 = arith.constant 0 : index
    %c1 = arith.constant 1 : index
    %c0_8 = arith.constant 0 : index
    %c0_9 = arith.constant 0 : index
    %4 = vector.load %arg1[%c0_7, %c1, %c0_8, %c0_9] : memref<2x3x32x16xf32, #tpu.memory_space<vmem>>, vector<2x1x32x16xf32>
    %5 = vector.shape_cast %4 : vector<2x1x32x16xf32> to vector<2x32x16xf32>
    %6 = arith.addf %1, %5 : vector<2x32x16xf32>
    %c0_10 = arith.constant 0 : index
    %c1_11 = arith.constant 1 : index
    %c0_12 = arith.constant 0 : index
    %c0_13 = arith.constant 0 : index
    %7 = vector.load %arg2[%c0_10, %c1_11, %c0_12, %c0_13] : memref<2x3x32x16xf32, #tpu.memory_space<vmem>>, vector<2x1x32x16xf32>
    %8 = vector.shape_cast %7 : vector<2x1x32x16xf32> to vector<2x32x16xf32>
    %9 = arith.addf %3, %8 : vector<2x32x16xf32>
    %c0_14 = arith.constant 0 : index
    %c2 = arith.constant 2 : index
    %c0_15 = arith.constant 0 : index
    %c0_16 = arith.constant 0 : index
    %10 = vector.load %arg1[%c0_14, %c2, %c0_15, %c0_16] : memref<2x3x32x16xf32, #tpu.memory_space<vmem>>, vector<2x1x32x16xf32>
    %11 = vector.shape_cast %10 : vector<2x1x32x16xf32> to vector<2x32x16xf32>
    %12 = arith.addf %6, %11 : vector<2x32x16xf32>
    %c0_17 = arith.constant 0 : index
    %c2_18 = arith.constant 2 : index
    %c0_19 = arith.constant 0 : index
    %c0_20 = arith.constant 0 : index
    %13 = vector.load %arg2[%c0_17, %c2_18, %c0_19, %c0_20] : memref<2x3x32x16xf32, #tpu.memory_space<vmem>>, vector<2x1x32x16xf32>
    %14 = vector.shape_cast %13 : vector<2x1x32x16xf32> to vector<2x32x16xf32>
    %15 = arith.addf %9, %14 : vector<2x32x16xf32>
    %16 = vector.shape_cast %12 : vector<2x32x16xf32> to vector<64x16xf32>
    %17 = vector.shape_cast %15 : vector<2x32x16xf32> to vector<64x16xf32>
    %c0_21 = arith.constant 0 : index
    %c0_22 = arith.constant 0 : index
    %18 = vector.load %arg3[%c0_21, %c0_22] : memref<16x64xf32, #tpu.memory_space<vmem>>, vector<16x64xf32>
    %cst = arith.constant dense<0.000000e+00> : vector<64x64xf32>
    %19 = tpu.matmul %16, %18, %cst {dimension_numbers = #tpu.dot_dimension_numbers<[1], [0], [0], [1], [0, 0, 1, 1], [], []>} : vector<64x16xf32>, vector<16x64xf32>, vector<64x64xf32> -> vector<64x64xf32>
    %c0_23 = arith.constant 0 : index
    %c0_24 = arith.constant 0 : index
    %20 = vector.load %arg4[%c0_23, %c0_24] : memref<16x64xf32, #tpu.memory_space<vmem>>, vector<16x64xf32>
    %cst_25 = arith.constant dense<0.000000e+00> : vector<64x64xf32>
    %21 = tpu.matmul %17, %20, %cst_25 {dimension_numbers = #tpu.dot_dimension_numbers<[1], [0], [0], [1], [0, 0, 1, 1], [], []>} : vector<64x16xf32>, vector<16x64xf32>, vector<64x64xf32> -> vector<64x64xf32>
    %22 = arith.addf %19, %21 : vector<64x64xf32>
    %c0_26 = arith.constant 0 : index
    %c0_27 = arith.constant 0 : index
    %23 = vector.load %arg5[%c0_26, %c0_27] : memref<1x64xf32, #tpu.memory_space<vmem>>, vector<1x64xf32>
    %24 = vector.broadcast %23 : vector<1x64xf32> to vector<64x64xf32>
    %25 = arith.addf %22, %24 : vector<64x64xf32>
    %cst_28 = arith.constant 0.000000e+00 : f32
    %26 = vector.broadcast %cst_28 : f32 to vector<64x64xf32>
    %27 = arith.maximumf %25, %26 : vector<64x64xf32>
    %28 = vector.broadcast %cst_28 : f32 to vector<64x64xf32>
    %29 = arith.subf %25, %28 : vector<64x64xf32>
    %30 = arith.cmpf one, %29, %29 : vector<64x64xf32>
    %31 = vector.broadcast %cst_28 : f32 to vector<64x64xf32>
    %32 = arith.addf %25, %31 : vector<64x64xf32>
    %33 = math.absf %29 : vector<64x64xf32>
    %cst_29 = arith.constant 0.000000e+00 : f32
    %34 = vector.broadcast %cst_29 : f32 to vector<64x64xf32>
    %35 = arith.subf %34, %33 : vector<64x64xf32>
    %36 = math.exp %35 : vector<64x64xf32>
    %37 = math.log1p %36 : vector<64x64xf32>
    %38 = arith.addf %27, %37 : vector<64x64xf32>
    %39 = arith.select %30, %32, %38 : vector<64x64xi1>, vector<64x64xf32>
    %c0_30 = arith.constant 0 : index
    %c0_31 = arith.constant 0 : index
    %40 = vector.load %arg6[%c0_30, %c0_31] : memref<64x4xf32, #tpu.memory_space<vmem>>, vector<64x4xf32>
    %cst_32 = arith.constant dense<0.000000e+00> : vector<64x4xf32>
    %41 = tpu.matmul %39, %40, %cst_32 {dimension_numbers = #tpu.dot_dimension_numbers<[1], [0], [0], [1], [0, 0, 1, 1], [], []>} : vector<64x64xf32>, vector<64x4xf32>, vector<64x4xf32> -> vector<64x4xf32>
    %c0_33 = arith.constant 0 : index
    %c0_34 = arith.constant 0 : index
    %42 = vector.load %arg7[%c0_33, %c0_34] : memref<1x4xf32, #tpu.memory_space<vmem>>, vector<1x4xf32>
    %43 = vector.broadcast %42 : vector<1x4xf32> to vector<64x4xf32>
    %44 = arith.addf %41, %43 : vector<64x4xf32>
    %45 = math.tanh %44 : vector<64x4xf32>
    %cst_35 = arith.constant 5.010000e-01 : f32
    %46 = vector.broadcast %cst_35 : f32 to vector<64x4xf32>
    %47 = arith.mulf %46, %45 : vector<64x4xf32>
    %cst_36 = arith.constant 5.000000e-01 : f32
    %48 = vector.broadcast %cst_36 : f32 to vector<64x4xf32>
    %49 = arith.addf %47, %48 : vector<64x4xf32>
    %50 = tpu.iota {dimensions = array<i32: 1>} : vector<1x4xi32>
    %c0_i32 = arith.constant 0 : i32
    %51 = vector.broadcast %c0_i32 : i32 to vector<1x4xi32>
    %52 = arith.cmpi eq, %50, %51 : vector<1x4xi32>
    %53 = vector.shape_cast %52 : vector<1x4xi1> to vector<1x4xi1>
    %54 = vector.broadcast %53 : vector<1x4xi1> to vector<64x4xi1>
    %55 = arith.select %54, %44, %49 : vector<64x4xi1>, vector<64x4xf32>
    %c0_37 = arith.constant 0 : index
    %c0_38 = arith.constant 0 : index
    %56 = vector.load %arg8[%c0_37, %c0_38] : memref<64x4xf32, #tpu.memory_space<vmem>>, vector<64x4xf32>
    tpu.vector_store %arg8[%c0_37, %c0_38], %55 {strides = array<i32>} : memref<64x4xf32, #tpu.memory_space<vmem>>, vector<64x4xf32>,
    return
  }
  func.func @transform_0(%arg0: i32) -> (i32, i32, i32, i32) {
    %c0_i32 = arith.constant 0 : i32
    %c0_i32_0 = arith.constant 0 : i32
    %c0_i32_1 = arith.constant 0 : i32
    %c0_i32_2 = arith.constant 0 : i32
    return %arg0, %c0_i32, %c0_i32_0, %c0_i32_1 : i32, i32, i32, i32
  }
  func.func @transform_1(%arg0: i32) -> (i32, i32, i32, i32) {
    %c0_i32 = arith.constant 0 : i32
    %c0_i32_0 = arith.constant 0 : i32
    %c0_i32_1 = arith.constant 0 : i32
    %c0_i32_2 = arith.constant 0 : i32
    return %arg0, %c0_i32, %c0_i32_0, %c0_i32_1 : i32, i32, i32, i32
  }
  func.func @transform_2(%arg0: i32) -> (i32, i32) {
    %c0_i32 = arith.constant 0 : i32
    %c0_i32_0 = arith.constant 0 : i32
    %c0_i32_1 = arith.constant 0 : i32
    return %c0_i32, %c0_i32_0 : i32, i32
  }
  func.func @transform_3(%arg0: i32) -> (i32, i32) {
    %c0_i32 = arith.constant 0 : i32
    %c0_i32_0 = arith.constant 0 : i32
    %c0_i32_1 = arith.constant 0 : i32
    return %c0_i32, %c0_i32_0 : i32, i32
  }
  func.func @transform_4(%arg0: i32) -> (i32, i32) {
    %c0_i32 = arith.constant 0 : i32
    %c0_i32_0 = arith.constant 0 : i32
    %c0_i32_1 = arith.constant 0 : i32
    return %c0_i32, %c0_i32_0 : i32, i32
  }
  func.func @transform_5(%arg0: i32) -> (i32, i32) {
    %c0_i32 = arith.constant 0 : i32
    %c0_i32_0 = arith.constant 0 : i32
    %c0_i32_1 = arith.constant 0 : i32
    return %c0_i32, %c0_i32_0 : i32, i32
  }
  func.func @transform_6(%arg0: i32) -> (i32, i32) {
    %c0_i32 = arith.constant 0 : i32
    %c0_i32_0 = arith.constant 0 : i32
    %c0_i32_1 = arith.constant 0 : i32
    return %c0_i32, %c0_i32_0 : i32, i32
  }
  func.func @transform_7(%arg0: i32) -> (i32, i32) {
    %c0_i32 = arith.constant 0 : i32
    %c0_i32_0 = arith.constant 0 : i32
    return %arg0, %c0_i32 : i32, i32
  }
}

</mosaic_0001>

<bundles_post_ra>
// kernel: tpu_custom_call.1
= control target key start
LH: loop header
LB: loop body
LE: loop exit
PB: predicated region body
PF: predicated region fallthrough
CT: control target
= control target key end

     0   :  { %s1379_s24 = smov 0   ;;  %s1670_s0 = inlined_call_operand.vmem [shape: f32[4,3,32,16], index: 0, kind: input, shape index: {}]   ;;  %s1671_s1 = inlined_call_operand.vmem [shape: f32[4,3,32,16], index: 1, kind: input, shape index: {}]   ;;  %s1672_s2 = inlined_call_operand.vmem [shape: f32[16,64], index: 2, kind: input, shape index: {}]   ;;  %s1673_s3 = inlined_call_operand.vmem [shape: f32[16,64], index: 3, kind: input, shape index: {}]   ;;  %s1674_s4 = inlined_call_operand.vmem [shape: f32[1,64], index: 4, kind: input, shape index: {}]   ;;  %s1675_s5 = inlined_call_operand.vmem [shape: f32[64,4], index: 5, kind: input, shape index: {}]   ;;  %s1676_s6 = inlined_call_operand.vmem [shape: f32[1,4], index: 6, kind: input, shape index: {}]   ;;  %s1677_s7 = inlined_call_operand.vmem [shape: f32[128,4], index: 7, kind: output, shape index: {}]  }
   0x1 LB: > { %s1075_s25 = sadd.s32 4294967295, %s1337_s24   ;;  %p1079_p0 = scmp.ge.s32.totalorder %s1337_s24, 1  ;;  %s1337_s24 = sphi %s1379_s24, %s17_s24  }
   0x2   : > { %p251_p1 = scmp.lt.s32.totalorder %s1337_s24, 3 }
   0x4   : > { %p252_p2 = pnand %p1079_p0, %p251_p1 }
   0x5   : > { %v396_v0 = vld [vmem:[%s1673_s3] sm:$0xff] (!%p252_p2)  ;;  %v397_v1 = vld [vmem:[%s1673_s3 + $0x8] sm:$0xff] (!%p252_p2)  ;;  %s1080_s30 = sshll.u32 (!%p252_p2), %s1075_s25, 1  ;;  %vm398_vm0 = vcmask (!%p252_p2), 130048   ;;  %vm831_vm1 = vcmask (!%p252_p2), 523264  }
   0x6   : > { %255 = sbr.rel (%p252_p2) target bundleno = 536 (0x218), region = 48  ;;  %v394_v2 = vld [vmem:[%s1672_s2] sm:$0xff] (!%p252_p2)  ;;  %v1242_v3 = vpack.c.bf16 (!%p252_p2), %v397_v1, %v396_v0  ;;  %p291_p3 = scmp.lt.s32.totalorder (!%p252_p2), %s1080_s30, 3  ;;  %v395_v4 = vld [vmem:[%s1672_s2 + $0x8] sm:$0xff] (!%p252_p2) }
   0x7   : > { %v1246_v5 = vpack.c.bf16 (!%p252_p2), %v395_v4, %v394_v2 }
   0x8   : > { %1243 = vmatprep.subr.bf16.mxu0 (!%p252_p2), %v1242_v3 }
   0x9   : > { %1245 = vmatpush3.bf16.msra.mxu0 (!%p252_p2), %v1242_v3 }
   0xa   : > { %1247 = vmatprep.subr.bf16.mxu0 (!%p252_p2), %v1246_v5 }
   0xd   : > { %s1685_s30 = smov (!%p291_p3, %s1080_s30), 3 }
   0xe   : > { %s1274_s12 = smul.u32 96, %s1685_s30 }
  0x10   : > { %s1404_s15 = scalar_lea.vmem %s1671_s1, %s1274_s12  ;;  %s1424_s18 = scalar_lea.vmem %s1670_s0, %s1274_s12 }
  0x11   : > { %v318_v6 = vld [vmem:[%s1404_s15] sm:$0xff]  ;;  %v319_v10 = vld [vmem:[%s1404_s15 + $0x8] sm:$0xff]  ;;  %v320_v14 = vld [vmem:[%s1404_s15 + $0x10] sm:$0xff] }
  0x12   : > { %v1094_v7 = vld [vmem:[%s1404_s15 + $0x20] sm:$0xff]  ;;  %v1095_v11 = vld [vmem:[%s1404_s15 + $0x28] sm:$0xff]  ;;  %v1096_v15 = vld [vmem:[%s1404_s15 + $0x30] sm:$0xff] }
  0x13   : > { %v1110_v8 = vld [vmem:[%s1404_s15 + $0x40] sm:$0xff]  ;;  %v352_v9 = vadd.f32 %v1094_v7, %v318_v6  ;;  %v1111_v12 = vld [vmem:[%s1404_s15 + $0x48] sm:$0xff]  ;;  %v353_v13 = vadd.f32 %v1095_v11, %v319_v10  ;;  %v1112_v16 = vld [vmem:[%s1404_s15 + $0x50] sm:$0xff]  ;;  %v354_v18 = vadd.f32 %v1096_v15, %v320_v14 }
  0x14   : > { %v321_v19 = vld [vmem:[%s1404_s15 + $0x18] sm:$0xff]  ;;  %v322_v24 = vld [vmem:[%s1404_s15 + $0x60] sm:$0xff]  ;;  %v323_v29 = vld [vmem:[%s1404_s15 + $0x68] sm:$0xff] }
  0x15   : > { %v386_v17 = vadd.f32 %v1110_v8, %v352_v9  ;;  %v1097_v20 = vld [vmem:[%s1404_s15 + $0x38] sm:$0xff]  ;;  %v387_v22 = vadd.f32 %v1111_v12, %v353_v13  ;;  %v1098_v25 = vld [vmem:[%s1404_s15 + $0x80] sm:$0xff]  ;;  %v388_v27 = vadd.f32 %v1112_v16, %v354_v18  ;;  %v1099_v30 = vld [vmem:[%s1404_s15 + $0x88] sm:$0xff] }
  0x16   : > { %v1113_v21 = vld [vmem:[%s1404_s15 + $0x58] sm:$0xff]  ;;  %v355_v23 = vadd.f32 %v1097_v20, %v321_v19  ;;  %v1114_v26 = vld [vmem:[%s1404_s15 + $0xa0] sm:$0xff]  ;;  %v356_v28 = vadd.f32 %v1098_v25, %v322_v24  ;;  %v357_v32 = vadd.f32 %v1099_v30, %v323_v29  ;;  %v324_v33 = vld [vmem:[%s1404_s15 + $0x70] sm:$0xff] }
  0x17   : > { %1186 = vmatprep.mubr.msk.f32.mxu0 %vm398_vm0, %v386_v17  ;;  %v1100_v34 = vld [vmem:[%s1404_s15 + $0x90] sm:$0xff]  ;;  %v1115_v36 = vld [vmem:[%s1404_s15 + $0xa8] sm:$0xff]  ;;  %v325_v38 = vld [vmem:[%s1404_s15 + $0x78] sm:$0xff] }
  0x18   : > { %1187 = vmatmul.mubr.msk.f32.vlgmr.msra.gmra.mrb[0].mxu0 %vm398_vm0, %v387_v22  ;;  %v389_v31 = vadd.f32 %v1113_v21, %v355_v23  ;;  %v390_v35 = vadd.f32 %v1114_v26, %v356_v28  ;;  %v358_v37 = vadd.f32 %v1100_v34, %v324_v33  ;;  %v1101_v39 = vld [vmem:[%s1404_s15 + $0x98] sm:$0xff]  ;;  %v1116_v40 = vld [vmem:[%s1404_s15 + $0xb0] sm:$0xff]  ;;  %v310_v41 = vld [vmem:[%s1424_s18] sm:$0xff]  ;;  %v391_v43 = vadd.f32 %v1115_v36, %v357_v32 }
  0x19   : > { %1249 = vmatpush3.bf16.msra.mxu0 %v1246_v5  ;;  %1189 = vmatprep.mubr.msk.f32.mxu0 %vm398_vm0, %v388_v27  ;;  %v1086_v42 = vld [vmem:[%s1424_s18 + $0x20] sm:$0xff]  ;;  %v359_v44 = vadd.f32 %v1101_v39, %v325_v38  ;;  %v1117_v46 = vld [vmem:[%s1404_s15 + $0xb8] sm:$0xff]  ;;  %v311_v48 = vld [vmem:[%s1424_s18 + $0x8] sm:$0xff] }
  0x1a   : > { %v392_v45 = vadd.f32 %v1116_v40, %v358_v37  ;;  %v335_v47 = vadd.f32 %v1086_v42, %v310_v41  ;;  %v1087_v49 = vld [vmem:[%s1424_s18 + $0x28] sm:$0xff]  ;;  %v1102_v50 = vld [vmem:[%s1424_s18 + $0x40] sm:$0xff]  ;;  %v312_v51 = vld [vmem:[%s1424_s18 + $0x10] sm:$0xff] }
  0x1b   : > { %v1088_v52 = vld [vmem:[%s1424_s18 + $0x30] sm:$0xff]  ;;  %v393_v53 = vadd.f32 %v1117_v46, %v359_v44  ;;  %v336_v54 = vadd.f32 %v1087_v49, %v311_v48  ;;  %v1103_v56 = vld [vmem:[%s1424_s18 + $0x48] sm:$0xff]  ;;  %v313_v58 = vld [vmem:[%s1424_s18 + $0x18] sm:$0xff] }
  0x1c   : > { %1190 = vmatmul.mubr.msk.f32.gmra.mrb[2].mxu0 %vm398_vm0, %v389_v31  ;;  %v369_v55 = vadd.f32 %v1102_v50, %v335_v47  ;;  %v337_v57 = vadd.f32 %v1088_v52, %v312_v51  ;;  %v1089_v59 = vld [vmem:[%s1424_s18 + $0x38] sm:$0xff]  ;;  %v1104_v60 = vld [vmem:[%s1424_s18 + $0x50] sm:$0xff]  ;;  %v314_v61 = vld [vmem:[%s1424_s18 + $0x60] sm:$0xff] }
  0x1d   : > { %1192 = vmatprep.mubr.msk.f32.mxu0 %vm398_vm0, %v390_v35  ;;  %v1090_v62 = vld [vmem:[%s1424_s18 + $0x80] sm:$0xff]  ;;  %v370_v63 = vadd.f32 %v1103_v56, %v336_v54  ;;  %v338_v0 = vadd.f32 %v1089_v59, %v313_v58  ;;  %v1105_v2 = vld [vmem:[%s1424_s18 + $0x58] sm:$0xff]  ;;  %v315_v4 = vld [vmem:[%s1424_s18 + $0x68] sm:$0xff] }
  0x1e   : > { %v371_v1 = vadd.f32 %v1104_v60, %v337_v57  ;;  %v339_v3 = vadd.f32 %v1090_v62, %v314_v61  ;;  %v1091_v5 = vld [vmem:[%s1424_s18 + $0x88] sm:$0xff]  ;;  %v1106_v6 = vld [vmem:[%s1424_s18 + $0xa0] sm:$0xff]  ;;  %v316_v7 = vld [vmem:[%s1424_s18 + $0x70] sm:$0xff] }
  0x1f   : > { %v1092_v8 = vld [vmem:[%s1424_s18 + $0x90] sm:$0xff]  ;;  %v372_v9 = vadd.f32 %v1105_v2, %v338_v0  ;;  %v340_v10 = vadd.f32 %v1091_v5, %v315_v4  ;;  %v1107_v12 = vld [vmem:[%s1424_s18 + $0xa8] sm:$0xff]  ;;  %v317_v14 = vld [vmem:[%s1424_s18 + $0x78] sm:$0xff] }
  0x20   : > { %1193 = vmatmul.mubr.msk.f32.gmra.mrb[4].mxu0 %vm398_vm0, %v391_v43  ;;  %v373_v11 = vadd.f32 %v1106_v6, %v339_v3  ;;  %v341_v13 = vadd.f32 %v1092_v8, %v316_v7  ;;  %v1093_v15 = vld [vmem:[%s1424_s18 + $0x98] sm:$0xff]  ;;  %v1108_v16 = vld [vmem:[%s1424_s18 + $0xb0] sm:$0xff]  ;;  %v816_v22 = vld [vmem:[%s1675_s5] sm:$0xff] }
  0x21   : > { %1195 = vmatprep.mubr.msk.f32.mxu0 %vm398_vm0, %v392_v45  ;;  %v374_v17 = vadd.f32 %v1107_v12, %v340_v10  ;;  %v342_v18 = vadd.f32 %v1093_v15, %v317_v14  ;;  %v1109_v20 = vld [vmem:[%s1424_s18 + $0xb8] sm:$0xff]  ;;  %v817_v23 = vld [vmem:[%s1675_s5 + $0x8] sm:$0xff]  ;;  %v818_v24 = vld [vmem:[%s1675_s5 + $0x10] sm:$0xff]  ;;  %s1084_s18 = sshll.u32 %s1075_s25, 3 }
  0x22   : > { %v375_v19 = vadd.f32 %v1108_v16, %v341_v13  ;;  %v1250_v25 = vpack.c.bf16 %v817_v23, %v816_v22  ;;  %v819_v26 = vld [vmem:[%s1675_s5 + $0x18] sm:$0xff]  ;;  %v820_v28 = vld [vmem:[%s1675_s5 + $0x20] sm:$0xff]  ;;  %v821_v29 = vld [vmem:[%s1675_s5 + $0x28] sm:$0xff]  ;;  %p305_p4 = scmp.lt.s32.totalorder %s1084_s18, 15 }
  0x23   : > { %v376_v21 = vadd.f32 %v1109_v20, %v342_v18  ;;  %v1254_v27 = vpack.c.bf16 %v819_v26, %v818_v24  ;;  %v1258_v30 = vpack.c.bf16 %v821_v29, %v820_v28  ;;  %v822_v31 = vld [vmem:[%s1675_s5 + $0x30] sm:$0xff]  ;;  %v823_v32 = vld [vmem:[%s1675_s5 + $0x38] sm:$0xff]  ;;  %v1134_v34 = vld [vmem:[%s1674_s4] ss:$0 sm:$0xff] }
  0x24   : > { %1196 = vmatmul.mubr.msk.f32.gmra.mrb[6].mxu0 %vm398_vm0, %v393_v53  ;;  %1251 = vmatprep.subr.bf16.mxu1 %v1250_v25  ;;  %v1262_v33 = vpack.c.bf16 %v823_v32, %v822_v31  ;;  %s1687_s18 = smov (!%p305_p4, %s1084_s18), 15 }
  0x25   : > { %1202 = vmatprep.mubr.msk.f32.mxu0 %vm398_vm0, %v369_v55  ;;  %1253 = vmatpush3.bf16.msra.mxu1 %v1250_v25  ;;  %s1085_s25 = sshll.u32 %s1687_s18, 3 }
  0x26   : > { %1255 = vmatprep.subr.bf16.mxu1 %v1254_v27  ;;  %s1641_s21 = scalar_lea.vmem %s1677_s7, %s1085_s25 }
  0x28   : > { %1203 = vmatmul.mubr.msk.f32.vlgmr.msra.gmra.mrb[0].mxu0 %vm398_vm0, %v370_v63 }
  0x29   : > { %1205 = vmatprep.mubr.msk.f32.mxu0 %vm398_vm0, %v371_v1  ;;  %1257 = vmatpush3.bf16.msra.mxu1 %v1254_v27 }
  0x2a   : > { %1259 = vmatprep.subr.bf16.mxu1 %v1258_v30 }
  0x2c   : > { %1206 = vmatmul.mubr.msk.f32.gmra.mrb[2].mxu0 %vm398_vm0, %v372_v9 }
  0x2d   : > { %1208 = vmatprep.mubr.msk.f32.mxu0 %vm398_vm0, %v373_v11  ;;  %1261 = vmatpush3.bf16.msra.mxu1 %v1258_v30 }
  0x2e   : > { %1263 = vmatprep.subr.bf16.mxu1 %v1262_v33 }
  0x30   : > { %1209 = vmatmul.mubr.msk.f32.gmra.mrb[4].mxu0 %vm398_vm0, %v374_v17 }
  0x31   : > { %1211 = vmatprep.mubr.msk.f32.mxu0 %vm398_vm0, %v375_v19  ;;  %1265 = vmatpush3.bf16.msra.mxu1 %v1262_v33 }
  0x34   : > { %1212 = vmatmul.mubr.msk.f32.gmra.mrb[6].mxu0 %vm398_vm0, %v376_v21 }
  0xfb   : > { %v1204_v35 = vpop.f32.mrb[0].mxu0 }
  0xfc   : > { %v1502_v36 = vadd.f32 %v1204_v35, %v1134_v34  ;;  %v618_v37 = vpop.f32.mrb[1].mxu0 }
  0xfd   : > { %v1504_v38 = vadd.f32 %v1134_v34, %v618_v37 }
  0xfe   : > { %v697_v39 = vand.u32 2147483647, %v1502_v36  ;;  %v673_v22 = vmax.f32 %v1502_v36, 0.0  ;;  %vm681_vm3 = vcmp.ne.f32.partialorder %v1502_v36, %v1502_v36 }
  0xff   : > { %v696_v40 = vand.u32 2147483647, %v1504_v38  ;;  %v1207_v41 = vpop.f32.mrb[2].mxu0  ;;  %v672_v25 = vmax.f32 %v1504_v38, 0.0  ;;  %vm680_vm2 = vcmp.ne.f32.partialorder %v1504_v38, %v1504_v38 }
 0x100   : > { %v705_v42 = vsub.f32 0.0, %v697_v39  ;;  %v1508_v43 = vadd.f32 %v1207_v41, %v1134_v34  ;;  %v628_v44 = vpop.f32.mrb[3].mxu0 }
 0x101   : > { %v704_v45 = vsub.f32 0.0, %v696_v40  ;;  %v1510_v46 = vadd.f32 %v1134_v34, %v628_v44 }
 0x102   : > { %v714_v47 = vmul.f32 1.442695, %v705_v42  ;;  %v699_v48 = vand.u32 2147483647, %v1508_v43  ;;  %v675_v33 = vmax.f32 %v1508_v43, 0.0  ;;  %vm683_vm7 = vcmp.ne.f32.partialorder %v1508_v43, %v1508_v43 }
 0x103   : > { %v712_v49 = vmul.f32 1.442695, %v704_v45  ;;  %v698_v50 = vand.u32 2147483647, %v1510_v46  ;;  %v1210_v51 = vpop.f32.mrb[4].mxu0  ;;  %vm682_vm6 = vcmp.ne.f32.partialorder %v1510_v46, %v1510_v46 }
 0x104   : > { %1283 = vpow2.f32 %v714_v47  ;;  %v707_v52 = vsub.f32 0.0, %v699_v48  ;;  %v1514_v53 = vadd.f32 %v1210_v51, %v1134_v34  ;;  %v638_v54 = vpop.f32.mrb[5].mxu0 }
 0x105   : > { %1285 = vpow2.f32 %v712_v49  ;;  %v706_v55 = vsub.f32 0.0, %v698_v50  ;;  %v1516_v56 = vadd.f32 %v1134_v34, %v638_v54 }
 0x106   : > { %v718_v57 = vmul.f32 1.442695, %v707_v52  ;;  %v701_v58 = vand.u32 2147483647, %v1514_v53  ;;  %v677_v35 = vmax.f32 %v1514_v53, 0.0  ;;  %vm685_vm12 = vcmp.ne.f32.partialorder %v1514_v53, %v1514_v53 }
 0x107   : > { %v716_v59 = vmul.f32 1.442695, %v706_v55  ;;  %v700_v60 = vand.u32 2147483647, %v1516_v56  ;;  %v1213_v61 = vpop.f32.mrb[6].mxu0  ;;  %v676_v39 = vmax.f32 %v1516_v56, 0.0  ;;  %vm684_vm13 = vcmp.ne.f32.partialorder %v1516_v56, %v1516_v56 }
 0x108   : > { %1287 = vpow2.f32 %v718_v57  ;;  %v709_v62 = vsub.f32 0.0, %v701_v58  ;;  %v1520_v63 = vadd.f32 %v1213_v61, %v1134_v34  ;;  %v648_v0 = vpop.f32.mrb[7].mxu0 }
 0x109   : > { %1289 = vpow2.f32 %v716_v59  ;;  %v708_v1 = vsub.f32 0.0, %v700_v60  ;;  %v1522_v2 = vadd.f32 %v1134_v34, %v648_v0  ;;  %v674_v34 = vmax.f32 %v1510_v46, 0.0 }
 0x10a   : > { %v722_v3 = vmul.f32 1.442695, %v709_v62  ;;  %v703_v4 = vand.u32 2147483647, %v1520_v63 }
 0x10b   : > { %v720_v5 = vmul.f32 1.442695, %v708_v1  ;;  %v702_v6 = vand.u32 2147483647, %v1522_v2  ;;  %vm686_vm0 = vcmp.ne.f32.partialorder %v1522_v2, %v1522_v2 }
 0x10c   : > { %1291 = vpow2.f32 %v722_v3  ;;  %v711_v7 = vsub.f32 0.0, %v703_v4 }
 0x10d   : > { %1293 = vpow2.f32 %v720_v5  ;;  %v710_v8 = vsub.f32 0.0, %v702_v6 }
 0x10e   : > { %v1284_v9 = vpop.eup %1283  ;;  %v726_v10 = vmul.f32 1.442695, %v711_v7 }
 0x10f   : > { %v1286_v11 = vpop.eup %1285  ;;  %v724_v12 = vmul.f32 1.442695, %v710_v8  ;;  %v737_v13 = vadd.f32 1.0, %v1284_v9  ;;  %v740_v19 = vmul.f32 -0.5, %v1284_v9  ;;  %v743_v26 = vand.u32 2147483647, %v1284_v9 }
 0x110   : > { %1295 = vpow2.f32 %v726_v10  ;;  %v728_v14 = vadd.f32 1.0, %v1286_v11  ;;  %v731_v18 = vmul.f32 -0.5, %v1286_v11  ;;  %v734_v30 = vand.u32 2147483647, %v1286_v11 }
 0x111   : > { %1297 = vpow2.f32 %v724_v12  ;;  %v741_v31 = vadd.f32 1.0, %v740_v19  ;;  %vm1550_vm4 = vcmp.lt.f32.partialorder %v743_v26, 0.0004427343 }
 0x112   : > { %v1288_v15 = vpop.eup %1287  ;;  %1299 = vlog2.f32 %v728_v14  ;;  %v732_v29 = vadd.f32 1.0, %v731_v18  ;;  %vm1556_vm5 = vcmp.lt.f32.partialorder %v734_v30, 0.0004427343 }
 0x113   : > { %v1526_v16 = vpop.eup %1289  ;;  %1301 = vlog2.f32 %v737_v13  ;;  %v755_v17 = vadd.f32 1.0, %v1288_v15  ;;  %v758_v23 = vmul.f32 -0.5, %v1288_v15  ;;  %v761_v41 = vand.u32 2147483647, %v1288_v15 }
 0x114   : > { %v746_v20 = vadd.f32 1.0, %v1526_v16  ;;  %v749_v27 = vmul.f32 -0.5, %v1526_v16  ;;  %v733_v50 = vmul.f32 %v1286_v11, %v732_v29  ;;  %v742_v52 = vmul.f32 %v1284_v9, %v741_v31 }
 0x115   : > { %1303 = vlog2.f32 %v755_v17  ;;  %v759_v40 = vadd.f32 1.0, %v758_v23  ;;  %v752_v58 = vand.u32 2147483647, %v1526_v16  ;;  %vm1567_vm8 = vcmp.lt.f32.partialorder %v761_v41, 0.0004427343 }
 0x116   : > { %v1529_v21 = vpop.eup %1291  ;;  %1305 = vlog2.f32 %v746_v20  ;;  %v750_v45 = vadd.f32 1.0, %v749_v27 }
 0x117   : > { %v1532_v24 = vpop.eup %1293  ;;  %v773_v28 = vadd.f32 1.0, %v1529_v21  ;;  %v776_v47 = vmul.f32 -0.5, %v1529_v21  ;;  %v760_v61 = vmul.f32 %v1288_v15, %v759_v40  ;;  %v779_v5 = vand.u32 2147483647, %v1529_v21 }
 0x118   : > { %v764_v32 = vadd.f32 1.0, %v1532_v24  ;;  %v767_v59 = vmul.f32 -0.5, %v1532_v24  ;;  %v751_v3 = vmul.f32 %v1526_v16, %v750_v45  ;;  %vm753_vm9 = vcmp.lt.f32.partialorder %v752_v58, 0.0004427343 }
 0x119   : > { %1307 = vlog2.f32 %v773_v28  ;;  %v777_v4 = vadd.f32 1.0, %v776_v47  ;;  %v770_v17 = vand.u32 2147483647, %v1532_v24  ;;  %vm780_vm10 = vcmp.lt.f32.partialorder %v779_v5, 0.0004427343 }
 0x11a   : > { %v1543_v37 = vpop.eup %1295  ;;  %1309 = vlog2.f32 %v764_v32  ;;  %v768_v13 = vadd.f32 1.0, %v767_v59 }
 0x11b   : > { %v1548_v42 = vpop.eup %1297  ;;  %v791_v48 = vadd.f32 1.0, %v1543_v37  ;;  %v794_v10 = vmul.f32 -0.5, %v1543_v37  ;;  %v778_v23 = vmul.f32 %v1529_v21, %v777_v4  ;;  %v797_v31 = vand.u32 2147483647, %v1543_v37 }
 0x11c   : > { %v1300_v49 = vpop.eup %1299  ;;  %v782_v54 = vadd.f32 1.0, %v1548_v42  ;;  %v785_v14 = vmul.f32 -0.5, %v1548_v42  ;;  %v769_v29 = vmul.f32 %v1532_v24, %v768_v13  ;;  %vm771_vm11 = vcmp.lt.f32.partialorder %v770_v17, 0.0004427343 }
 0x11d   : > { %v1302_v55 = vpop.eup %1301  ;;  %v730_v57 = vmul.f32 0.6931472, %v1300_v49  ;;  %1311 = vlog2.f32 %v791_v48  ;;  %v795_v27 = vadd.f32 1.0, %v794_v10  ;;  %v788_v32 = vand.u32 2147483647, %v1548_v42 }
 0x11e   : > { %v739_v60 = vmul.f32 0.6931472, %v1302_v55  ;;  %1313 = vlog2.f32 %v782_v54  ;;  %v786_v30 = vadd.f32 1.0, %v785_v14  ;;  %vm798_vm14 = vcmp.lt.f32.partialorder %v797_v31, 0.0004427343 }
 0x11f   : > { %v1304_v0 = vpop.eup %1303  ;;  %v736_v1 = vsel %vm1556_vm5, %v733_v50, %v730_v57  ;;  %v796_v45 = vmul.f32 %v1543_v37, %v795_v27  ;;  %vm789_vm15 = vcmp.lt.f32.partialorder %v788_v32, 0.0004427343 }
 0x120   : > { %v1306_v6 = vpop.eup %1305  ;;  %v800_v7 = vadd.f32 %v736_v1, %v672_v25  ;;  %v745_v8 = vsel %vm1550_vm4, %v742_v52, %v739_v60  ;;  %v757_v9 = vmul.f32 0.6931472, %v1304_v0  ;;  %v787_v48 = vmul.f32 %v1548_v42, %v786_v30 }
 0x121   : > { %v801_v11 = vadd.f32 %v745_v8, %v673_v22  ;;  %v748_v12 = vmul.f32 0.6931472, %v1306_v6 }
 0x122   : > { %v808_v15 = vsel %vm680_vm2, %v1504_v38, %v800_v7  ;;  %v763_v16 = vsel %vm1567_vm8, %v760_v61, %v757_v9  ;;  %vm687_vm2 = vcmp.ne.f32.partialorder %v1520_v63, %v1520_v63 }
 0x123   : > { %v1308_v18 = vpop.eup %1307  ;;  %1230 = vmatprep.mubr.msk.f32.mxu1 %vm831_vm1, %v808_v15  ;;  %v809_v19 = vsel %vm681_vm3, %v1502_v36, %v801_v11  ;;  %v754_v20 = vsel %vm753_vm9, %v751_v3, %v748_v12  ;;  %v803_v22 = vadd.f32 %v763_v16, %v675_v33  ;;  %vm998_vm3 = vcmask 31744  }
 0x124   : > { %v1310_v25 = vpop.eup %1309  ;;  %1231 = vmatmul.mubr.msk.f32.vlgmr.msra.gmra.mrb[0].mxu1 %vm831_vm1, %v809_v19  ;;  %v802_v38 = vadd.f32 %v754_v20, %v674_v34  ;;  %v775_v26 = vmul.f32 0.6931472, %v1308_v18 }
 0x125   : > { %v766_v28 = vmul.f32 0.6931472, %v1310_v25  ;;  %v811_v24 = vsel %vm683_vm7, %v1508_v43, %v803_v22  ;;  %v679_v43 = vmax.f32 %v1520_v63, 0.0 }
 0x126   : > { %v810_v36 = vsel %vm682_vm6, %v1510_v46, %v802_v38  ;;  %v781_v21 = vsel %vm780_vm10, %v778_v23, %v775_v26 }
 0x127   : > { %v1312_v33 = vpop.eup %1311  ;;  %1233 = vmatprep.mubr.msk.f32.mxu1 %vm831_vm1, %v810_v36  ;;  %v772_v34 = vsel %vm771_vm11, %v769_v29, %v766_v28  ;;  %v805_v40 = vadd.f32 %v781_v21, %v677_v35  ;;  %v678_v35 = vmax.f32 %v1522_v2, 0.0 }
 0x128   : > { %v1314_v46 = vpop.eup %1313  ;;  %1234 = vmatmul.mubr.msk.f32.gmra.mrb[2].mxu1 %vm831_vm1, %v811_v24  ;;  %v804_v41 = vadd.f32 %v772_v34, %v676_v39  ;;  %v793_v44 = vmul.f32 0.6931472, %v1312_v33 }
 0x129   : > { %v784_v47 = vmul.f32 0.6931472, %v1314_v46  ;;  %v813_v37 = vsel %vm685_vm12, %v1514_v53, %v805_v40  ;;  %v1135_v53 = vld [vmem:[%s1676_s6] ss:$0 sm:$0xff] }
 0x12a   : > { %v812_v49 = vsel %vm684_vm13, %v1516_v56, %v804_v41  ;;  %v799_v50 = vsel %vm798_vm14, %v796_v45, %v793_v44 }
 0x12b   : > { %1236 = vmatprep.mubr.msk.f32.mxu1 %vm831_vm1, %v812_v49  ;;  %v790_v39 = vsel %vm789_vm15, %v787_v48, %v784_v47  ;;  %v807_v51 = vadd.f32 %v799_v50, %v679_v43 }
 0x12c   : > { %1237 = vmatmul.mubr.msk.f32.gmra.mrb[4].mxu1 %vm831_vm1, %v813_v37  ;;  %v806_v42 = vadd.f32 %v790_v39, %v678_v35 }
 0x12d   : > { %v815_v52 = vsel %vm687_vm2, %v1520_v63, %v807_v51  ;;  %v985_v63 = vlaneseq }
 0x12e   : > { %v814_v56 = vsel %vm686_vm0, %v1522_v2, %v806_v42 }
 0x12f   : > { %1239 = vmatprep.mubr.msk.f32.mxu1 %vm831_vm1, %v814_v56  ;;  %v986_v4 = vand.u32 127, %v985_v63 }
 0x130   : > { %1240 = vmatmul.mubr.msk.f32.gmra.mrb[6].mxu1 %vm831_vm1, %v815_v52 }
 0x131   : > { %vm987_vm1 = vcmp.eq.s32.totalorder %v986_v4, 0 }
 0x1f7   : > { %v1232_v54 = vpop.f32.mrb[0].mxu1 }
 0x1f8   : > { %v928_v55 = vadd.f32 %v1232_v54, %v1135_v53  ;;  %v922_v57 = vpop.f32.mrb[1].mxu1 }
 0x1f9   : > { %v923_v58 = vadd.f32 %v1135_v53, %v922_v57 }
 0x1fa   : > { %1315 = vtanh.f32 %v928_v55 }
 0x1fb   : > { %1317 = vtanh.f32 %v923_v58  ;;  %v1235_v2 = vpop.f32.mrb[2].mxu1 }
 0x1fc   : > { %v938_v59 = vadd.f32 %v1235_v2, %v1135_v53  ;;  %v932_v60 = vpop.f32.mrb[3].mxu1 }
 0x1fd   : > { %v933_v61 = vadd.f32 %v1135_v53, %v932_v60 }
 0x1fe   : > { %1319 = vtanh.f32 %v938_v59 }
 0x1ff   : > { %1321 = vtanh.f32 %v933_v61  ;;  %v1238_v62 = vpop.f32.mrb[4].mxu1 }
 0x200   : > { %v948_v0 = vadd.f32 %v1238_v62, %v1135_v53  ;;  %v942_v1 = vpop.f32.mrb[5].mxu1 }
 0x201   : > { %v943_v3 = vadd.f32 %v1135_v53, %v942_v1 }
 0x202   : > { %1323 = vtanh.f32 %v948_v0 }
 0x203   : > { %1325 = vtanh.f32 %v943_v3  ;;  %v1241_v5 = vpop.f32.mrb[6].mxu1 }
 0x204   : > { %v1316_v6 = vpop.eup %1315  ;;  %v958_v7 = vadd.f32 %v1241_v5, %v1135_v53  ;;  %v952_v8 = vpop.f32.mrb[7].mxu1 }
 0x205   : > { %v1318_v9 = vpop.eup %1317  ;;  %v970_v10 = vmul.f32 0.501, %v1316_v6  ;;  %v953_v11 = vadd.f32 %v1135_v53, %v952_v8 }
 0x206   : > { %v969_v12 = vmul.f32 0.501, %v1318_v9  ;;  %1327 = vtanh.f32 %v958_v7 }
 0x207   : > { %v978_v13 = vadd.f32 0.5, %v970_v10  ;;  %1329 = vtanh.f32 %v953_v11 }
 0x208   : > { %v1320_v14 = vpop.eup %1319  ;;  %v977_v15 = vadd.f32 0.5, %v969_v12 }
 0x209   : > { %v1322_v16 = vpop.eup %1321  ;;  %v991_v17 = vsel %vm987_vm1, %v928_v55, %v978_v13  ;;  %v972_v18 = vmul.f32 0.501, %v1320_v14 }
 0x20a   : > { %1000 = vst.msk [vmem:[%s1641_s21 + $0x8] sm:$0xff] %vm998_vm3, %v991_v17  ;;  %v990_v19 = vsel %vm987_vm1, %v923_v58, %v977_v15  ;;  %v971_v20 = vmul.f32 0.501, %v1322_v16 }
 0x20b   : > { %999 = vst.msk [vmem:[%s1641_s21] sm:$0xff] %vm998_vm3, %v990_v19  ;;  %v980_v22 = vadd.f32 0.5, %v972_v18 }
 0x20c   : > { %v1324_v23 = vpop.eup %1323  ;;  %v979_v25 = vadd.f32 0.5, %v971_v20 }
 0x20d   : > { %v1326_v38 = vpop.eup %1325  ;;  %v993_v26 = vsel %vm987_vm1, %v938_v59, %v980_v22  ;;  %v974_v27 = vmul.f32 0.501, %v1324_v23 }
 0x20e   : > { %1002 = vst.msk [vmem:[%s1641_s21 + $0x18] sm:$0xff] %vm998_vm3, %v993_v26  ;;  %v992_v28 = vsel %vm987_vm1, %v933_v61, %v979_v25  ;;  %v973_v29 = vmul.f32 0.501, %v1326_v38 }
 0x20f   : > { %1001 = vst.msk [vmem:[%s1641_s21 + $0x10] sm:$0xff] %vm998_vm3, %v992_v28  ;;  %v982_v30 = vadd.f32 0.5, %v974_v27 }
 0x210   : > { %v1328_v31 = vpop.eup %1327  ;;  %v981_v36 = vadd.f32 0.5, %v973_v29 }
 0x211   : > { %v1330_v21 = vpop.eup %1329  ;;  %v995_v32 = vsel %vm987_vm1, %v948_v0, %v982_v30  ;;  %v976_v33 = vmul.f32 0.501, %v1328_v31 }
 0x212   : > { %1004 = vst.msk [vmem:[%s1641_s21 + $0x28] sm:$0xff] %vm998_vm3, %v995_v32  ;;  %v994_v24 = vsel %vm987_vm1, %v943_v3, %v981_v36  ;;  %v975_v34 = vmul.f32 0.501, %v1330_v21 }
 0x213   : > { %1003 = vst.msk [vmem:[%s1641_s21 + $0x20] sm:$0xff] %vm998_vm3, %v994_v24  ;;  %v984_v40 = vadd.f32 0.5, %v976_v33 }
 0x214   : > { %v983_v46 = vadd.f32 0.5, %v975_v34 }
 0x215   : > { %v997_v41 = vsel %vm987_vm1, %v958_v7, %v984_v40 }
 0x216   : > { %1006 = vst.msk [vmem:[%s1641_s21 + $0x38] sm:$0xff] %vm998_vm3, %v997_v41  ;;  %v996_v44 = vsel %vm987_vm1, %v953_v11, %v983_v46 }
 0x217   : > { %1005 = vst.msk [vmem:[%s1641_s21 + $0x30] sm:$0xff] %vm998_vm3, %v996_v44 }
 0x218 PF: > { %s17_s24 = sadd.s32 1, %s1337_s24  }
 0x219   : > { %p14_p5 = scmp.ge.s32.totalorder %s17_s24, 4  }
 0x21b   :  { %16 = sbr.rel (!%p14_p5) target bundleno = 1 (0x1), region = 85 }

</bundles_post_ra>
